<compile_context>
chip_gen: v6e
topology: v6e:2x2x1
jax: 0.10.0
libtpu: 0.0.40
codegen_flags: <defaults>
</compile_context>

<pallas_src>
import math
from functools import partial

import jax
import jax.numpy as jnp
from jax import lax
from jax.experimental import pallas as pl
from jax.experimental.pallas import tpu as pltpu


# ---------------------------------------------------------------------------
# Kernels
# ---------------------------------------------------------------------------

def _matmul_kernel(x_ref, w_ref, o_ref, acc_ref):
    """One (tm, tn) output tile, streaming over K tiles.

    x_ref: (tm, tk)   activation tile
    w_ref: (tn, tk)   weight tile in PyTorch (out, in) layout (no wrapper transpose)
    acc_ref: (tm, tn) f32 scratch accumulator (lives across the K grid axis)
    """
    @pl.when(pl.program_id(2) == 0)
    def _():
        acc_ref[...] = jnp.zeros_like(acc_ref)

    # y = x @ W^T : contract the K axis of x (dim 1) with the K axis of W (dim 1).
    acc_ref[...] += lax.dot_general(
        x_ref[...], w_ref[...],
        dimension_numbers=(((1,), (1,)), ((), ())),
        preferred_element_type=jnp.float32,
    )

    @pl.when(pl.program_id(2) == pl.num_programs(2) - 1)
    def _():
        o_ref[...] = acc_ref[...].astype(o_ref.dtype)


def _matmul_bias_kernel(x_ref, w_ref, b_ref, o_ref, acc_ref):
    """Same as _matmul_kernel but adds bias in the final-k epilogue only."""
    @pl.when(pl.program_id(2) == 0)
    def _():
        acc_ref[...] = jnp.zeros_like(acc_ref)

    acc_ref[...] += lax.dot_general(
        x_ref[...], w_ref[...],
        dimension_numbers=(((1,), (1,)), ((), ())),
        preferred_element_type=jnp.float32,
    )

    @pl.when(pl.program_id(2) == pl.num_programs(2) - 1)
    def _():
        o_ref[...] = (acc_ref[...] + b_ref[...].astype(jnp.float32)).astype(o_ref.dtype)


# ---------------------------------------------------------------------------
# Tile selection helpers
# ---------------------------------------------------------------------------

def _round_up(x, m):
    return ((x + m - 1) // m) * m


def _pick_k_tile(k, max_tk=1024):
    """K is the contraction axis: the tile must divide K exactly (otherwise the
    unspecified boundary padding would corrupt valid outputs)."""
    if k <= max_tk:
        return k
    for tk in range(max_tk, 127, -128):           # lane-aligned divisors only
        if k % tk == 0:
            return tk
    return k  # no aligned divisor: single full-K block (still correct)


def _pick_n_tile(n, max_tn=512):
    """N boundary blocks are clipped on store, so tn only needs to be a multiple
    of 128 (lane-dense stores) or the full dim."""
    if n <= max_tn:
        return n
    return 256


# ---------------------------------------------------------------------------
# Wrapper
# ---------------------------------------------------------------------------

def linear_norm_forward(x, weight, bias=None, *, tm=256, compute_dtype=None):
    """y = x @ weight.T (+ bias).   weight: (out_features, in_features).

    compute_dtype: optionally cast x / weight (e.g. jnp.bfloat16) before the MXU
    matmul; accumulation is always f32 and the output keeps x's original dtype.
    """
    orig_shape = x.shape
    in_features = orig_shape[-1]
    out_features, wk = weight.shape
    assert wk == in_features, "weight must be (out_features, in_features)"
    out_dtype = x.dtype

    x2d = x.reshape(-1, in_features)
    M = x2d.shape[0]

    if compute_dtype is not None:
        x2d = x2d.astype(compute_dtype)
        weight = weight.astype(compute_dtype)

    # Row tile: multiple of 8 (sublane constraint); boundary block clipped on store.
    tm = min(tm, _round_up(max(M, 1), 8))
    tn = _pick_n_tile(out_features)
    tk = _pick_k_tile(in_features)

    grid = (pl.cdiv(M, tm), pl.cdiv(out_features, tn), pl.cdiv(in_features, tk))

    in_specs = [
        pl.BlockSpec((tm, tk), lambda i, j, k: (i, k)),   # x tile
        pl.BlockSpec((tn, tk), lambda i, j, k: (j, k)),   # weight tile, (out, in) layout
    ]
    args = [x2d, weight]
    kernel = _matmul_kernel
    if bias is not None:
        in_specs.append(pl.BlockSpec((1, tn), lambda i, j, k: (0, j)))
        args.append(bias.reshape(1, out_features))
        kernel = _matmul_bias_kernel

    itemsize = lambda a: jnp.dtype(a.dtype).itemsize
    cost = pl.CostEstimate(
        flops=2 * M * in_features * out_features,
        transcendentals=0,
        bytes_accessed=(x2d.size * itemsize(x2d)
                        + weight.size * itemsize(weight)
                        + M * out_features * jnp.dtype(out_dtype).itemsize),
    )

    y2d = pl.pallas_call(
        kernel,
        out_shape=jax.ShapeDtypeStruct((M, out_features), out_dtype),
        grid_spec=pltpu.PrefetchScalarGridSpec(
            num_scalar_prefetch=0,
            grid=grid,
            in_specs=in_specs,
            out_specs=pl.BlockSpec((tm, tn), lambda i, j, k: (i, j)),
            scratch_shapes=[pltpu.VMEM((tm, tn), jnp.float32)],
        ),
        compiler_params=pltpu.CompilerParams(
            dimension_semantics=("parallel", "parallel", "arbitrary"),
            vmem_limit_bytes=48 * 1024 * 1024,   # safe on v5e/v6e/v7x; tiles are far smaller
        ),
        cost_estimate=cost,
    )(*args)

    return y2d.reshape(*orig_shape[:-1], out_features)


# ---------------------------------------------------------------------------
# Params (matches nn.init.xavier_uniform_ + zero bias)
# ---------------------------------------------------------------------------

def init_linear_norm_params(key, in_features, out_features, bias=False,
                            dtype=jnp.float32):
    bound = math.sqrt(6.0 / (in_features + out_features))
    weight = jax.random.uniform(
        key, (out_features, in_features), dtype=dtype, minval=-bound, maxval=bound
    )
    b = jnp.zeros((out_features,), dtype=dtype) if bias else None
    return weight, b


# ---------------------------------------------------------------------------
# Demo / correctness check
# ---------------------------------------------------------------------------

if __name__ == "__main__":
    key = jax.random.PRNGKey(0)
    k_w, k_x, k_b = jax.random.split(key, 3)

    batch, seq, in_features, out_features = 2, 8, 32, 48
    weight, _ = init_linear_norm_params(k_w, in_features, out_features, bias=False)
    x = jax.random.normal(k_x, (batch, seq, in_features), dtype=jnp.float32)

    # 1) Module default: bias=False, f32 compute (exact check).
    y = linear_norm_forward(x, weight)
    jax.block_until_ready(y)
    y_ref = x @ weight.T
    assert y.shape == (batch, seq, out_features)
    assert jnp.allclose(y, y_ref, atol=1e-5, rtol=1e-5)

    # 2) Bias path (module with bias=True; use a nonzero bias to exercise the add).
    bias = jax.random.normal(k_b, (out_features,), dtype=jnp.float32) * 0.1
    yb = linear_norm_forward(x, weight, bias)
    jax.block_until_ready(yb)
    assert jnp.allclose(yb, x @ weight.T + bias, atol=1e-5, rtol=1e-5)

    # 3) bf16 compute path (MXU-friendly on v6e/v7x), f32 accumulation.
    ybf = linear_norm_forward(x, weight, None, compute_dtype=jnp.bfloat16)
    jax.block_until_ready(ybf)
    ref_bf = jnp.dot(x.astype(jnp.bfloat16), weight.astype(jnp.bfloat16).T,
                     preferred_element_type=jnp.float32)
    assert jnp.allclose(ybf, ref_bf, atol=1e-2, rtol=1e-2)

    print("KERNEL_OK")
</pallas_src>

<mosaic_0001>
module attributes {stable_mosaic.version = 11 : i64} {
  func.func @_matmul_kernel(%arg0: i32, %arg1: i32, %arg2: i32, %arg3: memref<16x32xf32, #tpu.memory_space<vmem>>, %arg4: memref<48x32xf32, #tpu.memory_space<vmem>>, %arg5: memref<16x48xf32, #tpu.memory_space<vmem>>, %arg6: memref<16x48xf32, #tpu.memory_space<vmem>>) attributes {dimension_semantics = [#tpu.dimension_semantics<parallel>, #tpu.dimension_semantics<parallel>, #tpu.dimension_semantics<arbitrary>], iteration_bounds = array<i64: 1, 1, 1>, scalar_prefetch = 0 : i64, scratch_operands = 1 : i64, tpu.core_type = #tpu.core_type<tc>, window_params = [{transform_indices = @transform_0, window_bounds = array<i64: 16, 32>}, {transform_indices = @transform_1, window_bounds = array<i64: 48, 32>}, {transform_indices = @transform_2, window_bounds = array<i64: 16, 48>}]} {
    %c0_i32 = arith.constant 0 : i32
    %0 = arith.cmpi eq, %arg2, %c0_i32 : i32
    %1 = arith.extui %0 : i1 to i32
    %c0_i32_0 = arith.constant 0 : i32
    %2 = arith.cmpi ne, %1, %c0_i32_0 : i32
    scf.if %2 {
      %cst_10 = arith.constant 0.000000e+00 : f32
      %12 = vector.broadcast %cst_10 : f32 to vector<16x48xf32>
      %c0_11 = arith.constant 0 : index
      %c0_12 = arith.constant 0 : index
      %13 = vector.load %arg6[%c0_11, %c0_12] : memref<16x48xf32, #tpu.memory_space<vmem>>, vector<16x48xf32>
      tpu.vector_store %arg6[%c0_11, %c0_12], %12 {strides = array<i32>} : memref<16x48xf32, #tpu.memory_space<vmem>>, vector<16x48xf32>,
    } else {
    }
    %c0 = arith.constant 0 : index
    %c0_1 = arith.constant 0 : index
    %3 = vector.load %arg6[%c0, %c0_1] : memref<16x48xf32, #tpu.memory_space<vmem>>, vector<16x48xf32>
    %c0_2 = arith.constant 0 : index
    %c0_3 = arith.constant 0 : index
    %4 = vector.load %arg3[%c0_2, %c0_3] : memref<16x32xf32, #tpu.memory_space<vmem>>, vector<16x32xf32>
    %c0_4 = arith.constant 0 : index
    %c0_5 = arith.constant 0 : index
    %5 = vector.load %arg4[%c0_4, %c0_5] : memref<48x32xf32, #tpu.memory_space<vmem>>, vector<48x32xf32>
    %cst = arith.constant dense<0.000000e+00> : vector<16x48xf32>
    %6 = tpu.matmul %4, %5, %cst {dimension_numbers = #tpu.dot_dimension_numbers<[1], [1], [0], [0], [0, 0, 1, 0], [], []>} : vector<16x32xf32>, vector<48x32xf32>, vector<16x48xf32> -> vector<16x48xf32>
    %7 = arith.addf %3, %6 : vector<16x48xf32>
    %c0_6 = arith.constant 0 : index
    %c0_7 = arith.constant 0 : index
    %8 = vector.load %arg6[%c0_6, %c0_7] : memref<16x48xf32, #tpu.memory_space<vmem>>, vector<16x48xf32>
    tpu.vector_store %arg6[%c0_6, %c0_7], %7 {strides = array<i32>} : memref<16x48xf32, #tpu.memory_space<vmem>>, vector<16x48xf32>,
    %c0_i32_8 = arith.constant 0 : i32
    %9 = arith.cmpi eq, %arg2, %c0_i32_8 : i32
    %10 = arith.extui %9 : i1 to i32
    %c0_i32_9 = arith.constant 0 : i32
    %11 = arith.cmpi ne, %10, %c0_i32_9 : i32
    scf.if %11 {
      %c0_10 = arith.constant 0 : index
      %c0_11 = arith.constant 0 : index
      %12 = vector.load %arg6[%c0_10, %c0_11] : memref<16x48xf32, #tpu.memory_space<vmem>>, vector<16x48xf32>
      %c0_12 = arith.constant 0 : index
      %c0_13 = arith.constant 0 : index
      %13 = vector.load %arg5[%c0_12, %c0_13] : memref<16x48xf32, #tpu.memory_space<vmem>>, vector<16x48xf32>
      tpu.vector_store %arg5[%c0_12, %c0_13], %12 {strides = array<i32>} : memref<16x48xf32, #tpu.memory_space<vmem>>, vector<16x48xf32>,
    } else {
    }
    return
  }
  func.func @transform_0(%arg0: i32, %arg1: i32, %arg2: i32) -> (i32, i32) {
    %c0_i32 = arith.constant 0 : i32
    return %arg0, %arg2 : i32, i32
  }
  func.func @transform_1(%arg0: i32, %arg1: i32, %arg2: i32) -> (i32, i32) {
    %c0_i32 = arith.constant 0 : i32
    return %arg1, %arg2 : i32, i32
  }
  func.func @transform_2(%arg0: i32, %arg1: i32, %arg2: i32) -> (i32, i32) {
    %c0_i32 = arith.constant 0 : i32
    return %arg0, %arg1 : i32, i32
  }
}

</mosaic_0001>

<bundles_post_ra>
// kernel: tpu_custom_call.1
= control target key start
LH: loop header
LB: loop body
LE: loop exit
PB: predicated region body
PF: predicated region fallthrough
CT: control target
= control target key end

     0   :  { %vm29_vm0 = vcmask 261120   ;;  %vm16_vm1 = vcmask 392192   ;;  %v214_v2 = vmov 0.0   ;;  %s280_s0 = inlined_call_operand.vmem [shape: f32[16,32], index: 0, kind: input, shape index: {}]   ;;  %s281_s1 = inlined_call_operand.vmem [shape: f32[48,32], index: 1, kind: input, shape index: {}]   ;;  %s282_s2 = inlined_call_operand.hbm [shape: f32[16,48], index: 2, kind: output, shape index: {}]  }
   0x1   :  { %v28_v0 = vld [vmem:[%s281_s1 + $0x28] sm:$0xff]  ;;  %v27_v1 = vld [vmem:[%s281_s1 + $0x20] sm:$0xff]  ;;  %18 = vst.msk [vmem:[#allocation2 + $0x8] sm:$0xff] %vm16_vm1, %v214_v2  ;;  %17 = vst.msk [vmem:[#allocation2] sm:$0xff] %vm16_vm1, %v214_v2 }
   0x2   :  { %173 = vmatprep.subr.msk.mxu0 %vm29_vm0, %v28_v0  ;;  %v21_v3 = vld [vmem:[%s280_s0] sm:$0xff] }
   0x3   :  { %174 = vmatpush3.xpose.msk.msra.mxu0 %vm29_vm0, %v28_v0 }
   0x4   :  { %7 = vsyncpa [#allocation4], 0  ;;  %175 = vmatprep.subr.msk.mxu0 %vm29_vm0, %v27_v1  ;;  %185 = vmatprep.mubr.msk.f32.mxu0 %vm29_vm0, %v21_v3  ;;  %v26_v4 = vld [vmem:[%s281_s1 + $0x18] sm:$0xff]  ;;  %v25_v5 = vld [vmem:[%s281_s1 + $0x10] sm:$0xff] }
   0x5   :  { %v24_v6 = vld [vmem:[%s281_s1 + $0x8] sm:$0xff]  ;;  %v23_v7 = vld [vmem:[%s281_s1] sm:$0xff]  ;;  %s215_s1 = smov [#allocation3]  }
   0x6   :  { %v22_v8 = vld [vmem:[%s280_s0 + $0x8] sm:$0xff]  ;;  %s146_s25 = sshll.u32 %s215_s1, 4  ;;  %s147_s25 = int_to_ptr.vmem [resolvable:$true] %s146_s25 }
   0x7   :  { %176 = vmatpush3.xpose.msk.msra.mxu0 %vm29_vm0, %v27_v1  ;;  %s192_s0 = scalar_lea.vmem %s147_s25, 256  ;;  %p197_p1 = scmp.lt.s32.totalorder %s147_s25, %s147_s25 }
   0x8   :  { %177 = vmatprep.subr.msk.mxu0 %vm29_vm0, %v26_v4  ;;  %v20_v9 = vld [vmem:[#allocation2 + $0x8] sm:$0xff]  ;;  %v19_v11 = vld [vmem:[#allocation2] sm:$0xff]  ;;  %p193_p0 = scmp.ne.s32.totalorder %s147_s25, %s192_s0  ;;  %p198_p2 = scmp.lt.s32.totalorder %s192_s0, %s192_s0 }
   0xa   :  { %p199_p3 = por %p198_p2, %p197_p1 }
   0xb   :  { %178 = vmatpush3.xpose.msk.msra.mxu0 %vm29_vm0, %v26_v4 }
   0xc   :  { %179 = vmatprep.subr.msk.mxu0 %vm29_vm0, %v25_v5  ;;  %p200_p4 = pnand %p199_p3, %p193_p0 }
   0xf   :  { %180 = vmatpush3.xpose.msk.msra.mxu0 %vm29_vm0, %v25_v5 }
  0x10   :  { %181 = vmatprep.subr.msk.mxu0 %vm29_vm0, %v24_v6 }
  0x13   :  { %182 = vmatpush3.xpose.msk.msra.mxu0 %vm29_vm0, %v24_v6 }
  0x14   :  { %183 = vmatprep.subr.msk.mxu0 %vm29_vm0, %v23_v7 }
  0x17   :  { %184 = vmatpush3.xpose.msk.msra.mxu0 %vm29_vm0, %v23_v7 }
  0x1a   :  { %186 = vmatmul.mubr.msk.f32.vlgmr.msra.gmra.mxu0 %vm29_vm0, %v22_v8 }
  0xda   :  { %v187_v10 = vpop.f32.mrf.mxu0 }
  0xdb   :  { %v130_v12 = vadd.f32 %v187_v10, %v20_v9 }
  0xdc   :  { %v120_v13 = vpop.f32.mrf.mxu0 }
  0xdd   :  { %133 = vst.msk [vmem:[#allocation2 + $0x8] sm:$0xff] %vm16_vm1, %v130_v12  ;;  %v129_v14 = vadd.f32 %v120_v13, %v19_v11 }
  0xdf   :  { %132 = vst.msk [vmem:[#allocation2] sm:$0xff] %vm16_vm1, %v129_v14 }
  0xe4   :  { %v138_v15 = vld [vmem:[#allocation2 + $0x8] sm:$0xff] }
  0xe5   :  { %140 = vst.msk [vmem:[#allocation3 + $0x8] sm:$0xff] %vm16_vm1, %v138_v15 }
  0xe6   :  { %v137_v16 = vld [vmem:[#allocation2] sm:$0xff] }
  0xe7   :  { %139 = vst.msk [vmem:[#allocation3] sm:$0xff] %vm16_vm1, %v137_v16 }
  0xe8   :  { %203 = shalt.err (!%p200_p4)
}
  0xe9   :  { %s216_s26 = smov 128   ;;  %s217_s27 = smov 8  }
  0xea   :  { %152 = dma.vmem_to_hbm [thread:$0]  %s147_s25, 256, %s282_s2, [#allocation4], %s216_s26, %s216_s26, %s217_s27  }
  0xeb   :  { %212 = dma.done.wait [#allocation4], 256  }
  0xec   :  { %213 = vsyncadd [#allocation4], 4294967040 }
  0xed   :  { %156 = vsyncpa [#allocation4], 1 }

</bundles_post_ra>
